<compile_context>
chip_gen: v5e
topology: v5e:2x2
jax: 0.10.0
libtpu: 0.0.40
codegen_flags: <defaults>
</compile_context>

<pallas_src>
import jax
import jax.numpy as jnp
from jax.experimental import pallas as pl
from jax.experimental.pallas import tpu as pltpu

TEMPERATURE = 0.07
_EPS = 1e-5


def _round_up(x, m):
    return (x + m - 1) // m * m


def _make_supcon_kernel(batch, tm, tn, num_j, inv_temp, has_col_pad, has_row_pad):
    """Builds the tiled kernel, closed over static shape/config parameters."""

    def kernel(lhs_ref, rhs_ref, trow_ref, tcol_ref, out_ref, m_s, cache_ref):
        # lhs_ref  : (TM, D)          row tile of projections
        # rhs_ref  : (D, TN)          column tile of pre-transposed projections
        # trow_ref : (TM, 1)  int32   targets (row tile)
        # tcol_ref : (num_j, 1, TN)   all column-tile targets (fetched once)
        # out_ref  : (TM, 1)  f32     per-sample loss for this row tile
        # m_s      : (TM, 1)  f32     running row max (scratch)
        # cache_ref: (num_j, TM, TN)  f32 score cache for this row tile (scratch)
        i = pl.program_id(0)
        j = pl.program_id(1)
        nj = pl.num_programs(1)

        @pl.when(j == 0)
        def _init():
            m_s[...] = jnp.full_like(m_s, -1e30)

        # Temperature folded into the (TM, D) LHS tile; the MXU emits the
        # tempered similarity tile directly.
        lhs = lhs_ref[...] * jnp.asarray(inv_temp, dtype=lhs_ref.dtype)
        s = jnp.dot(lhs, rhs_ref[...], preferred_element_type=jnp.float32)  # (TM, TN)
        cache_ref[j] = s                                   # cache for the replay pass

        # Exact row max (matches torch.max(dot, dim=1)); padded columns excluded.
        if has_col_pad:
            col_ids = j * tn + jax.lax.broadcasted_iota(jnp.int32, (tm, tn), 1)
            s_valid = jnp.where(col_ids < batch, s, -1e30)
        else:
            s_valid = s
        m_s[...] = jnp.maximum(m_s[...], jnp.max(s_valid, axis=1, keepdims=True))

        # ---------- Final column tile: replay the cached scores ----------
        @pl.when(j == nj - 1)
        def _finalize():
            m = m_s[...]
            trow = trow_ref[...]
            row_ids = i * tm + jax.lax.broadcasted_iota(jnp.int32, (tm, tn), 0)

            def body(jj, carry):
                denom, numer, card = carry
                s_c = cache_ref[jj]                                  # (TM, TN)
                # exp_dot exactly as the reference: exp(s - rowmax) + 1e-5.
                e = jnp.exp(s_c - m) + _EPS
                col_ids = jj * tn + jax.lax.broadcasted_iota(jnp.int32, (tm, tn), 1)
                anchor = row_ids != col_ids                          # drop self-pairs
                if has_col_pad:
                    anchor = jnp.logical_and(anchor, col_ids < batch)
                positive = jnp.logical_and(anchor, trow == tcol_ref[jj])

                denom = denom + jnp.sum(jnp.where(anchor, e, 0.0),
                                        axis=1, keepdims=True)
                # Log-form rewrite: no (TM, TN) divide; per-element log stays on EUP.
                numer = numer + jnp.sum(jnp.where(positive, jnp.log(e), 0.0),
                                        axis=1, keepdims=True)
                card = card + jnp.sum(positive.astype(jnp.float32),
                                      axis=1, keepdims=True)
                return denom, numer, card

            zero = jnp.zeros((tm, 1), jnp.float32)
            denom, numer, card = jax.lax.fori_loop(0, num_j, body, (zero, zero, zero))

            # Guard samples with no same-class partner (documented precondition of
            # the torch module; the unguarded reference would produce NaN there).
            card_safe = jnp.maximum(card, 1.0)
            per_sample = jnp.log(denom) - numer / card_safe
            valid = card > 0.0
            if has_row_pad:
                rids = i * tm + jax.lax.broadcasted_iota(jnp.int32, (tm, 1), 0)
                valid = jnp.logical_and(valid, rids < batch)
            out_ref[...] = jnp.where(valid, per_sample, 0.0)

    return kernel


def supervised_contrastive_loss(projections, targets, *, temperature=TEMPERATURE,
                                tile_m=256, tile_n=512, matmul_dtype=jnp.float32):
    """projections: [B, D] f32, targets: [B] int -> scalar f32 loss."""
    B, D = projections.shape
    assert targets.shape == (B,), targets.shape
    assert B >= 2, "need at least two samples"

    # Column tile: a single tile spanning the full dim, or a multiple of 128 lanes.
    if B <= tile_n:
        tn = B
    else:
        assert tile_n % 128 == 0, tile_n
        tn = tile_n
    b_pad_c = _round_up(B, tn)
    num_j = b_pad_c // tn

    # Row tile: multiple of 8 sublanes (or the full padded dim when B is small),
    # shrunk so the per-row-tile score cache stays within budget.
    if B <= tile_m:
        tm = _round_up(B, 8)
    else:
        assert tile_m % 8 == 0, tile_m
        tm = tile_m
    cache_budget = 8 << 20
    max_tm = max(8, (cache_budget // (b_pad_c * 4)) // 8 * 8)
    tm = min(tm, max_tm)
    b_pad_r = _round_up(B, tm)
    num_i = b_pad_r // tm

    proj = projections.astype(matmul_dtype)
    lhs = proj
    if b_pad_r != B:
        lhs = jnp.pad(proj, ((0, b_pad_r - B), (0, 0)))
    rhs = proj.T                        # pre-transposed: kernel does [TM,D] @ [D,TN]
    if b_pad_c != B:
        rhs = jnp.pad(rhs, ((0, 0), (0, b_pad_c - B)))

    t = targets.astype(jnp.int32)
    t_row = jnp.pad(t, (0, b_pad_r - B), constant_values=-1).reshape(b_pad_r, 1)
    t_col = jnp.pad(t, (0, b_pad_c - B), constant_values=-1).reshape(num_j, 1, tn)

    kernel = _make_supcon_kernel(B, tm, tn, num_j, 1.0 / temperature,
                                 has_col_pad=(b_pad_c != B),
                                 has_row_pad=(b_pad_r != B))

    itemsize = jnp.dtype(matmul_dtype).itemsize
    vmem_bytes = (2 * (tm * D + D * tn) * itemsize   # double-buffered matmul inputs
                  + num_j * tm * tn * 4              # score cache
                  + (4 * tm + num_j * tn) * 4        # target tiles + output + row max
                  + 8 * tm * tn * 4                  # finalize-pass temporaries
                  + (8 << 20))                       # headroom (compiler scratch)
    vmem_bytes = int(min(max(vmem_bytes, 16 << 20), 64 << 20))   # v7x-safe cap

    per_sample = pl.pallas_call(
        kernel,
        out_shape=jax.ShapeDtypeStruct((b_pad_r, 1), jnp.float32),
        grid_spec=pltpu.PrefetchScalarGridSpec(
            num_scalar_prefetch=0,
            grid=(num_i, num_j),      # (row tiles, column tiles)
            in_specs=[
                pl.BlockSpec((tm, D), lambda i, j: (i, 0)),
                pl.BlockSpec((D, tn), lambda i, j: (0, j)),
                pl.BlockSpec((tm, 1), lambda i, j: (i, 0)),
                pl.BlockSpec((num_j, 1, tn), lambda i, j: (0, 0, 0)),
            ],
            out_specs=pl.BlockSpec((tm, 1), lambda i, j: (i, 0)),
            scratch_shapes=[
                pltpu.VMEM((tm, 1), jnp.float32),          # running row max
                pltpu.VMEM((num_j, tm, tn), jnp.float32),  # score cache
            ],
        ),
        compiler_params=pltpu.CompilerParams(
            dimension_semantics=("parallel", "arbitrary"),
            vmem_limit_bytes=vmem_bytes,
        ),
    )(lhs, rhs, t_row, t_col)

    return jnp.sum(per_sample) / jnp.float32(B)


def _reference(projections, targets, temperature=TEMPERATURE):
    """Pure-JAX mirror of the PyTorch module.

    The temperature is folded into the matmul LHS (mathematically identical to
    dividing the dot-product matrix afterwards); this keeps the matmul inputs
    identical to what the Pallas kernel feeds the MXU.
    """
    B = projections.shape[0]
    dot = (projections * (1.0 / temperature)) @ projections.T
    exp_dot = jnp.exp(dot - jnp.max(dot, axis=1, keepdims=True)) + 1e-5
    mask_similar = (targets[:, None] == targets[None, :]).astype(jnp.float32)
    mask_anchor_out = 1.0 - jnp.eye(B, dtype=jnp.float32)
    mask_combined = mask_similar * mask_anchor_out
    cardinality = jnp.sum(mask_combined, axis=1)
    log_prob = -jnp.log(exp_dot / jnp.sum(exp_dot * mask_anchor_out, axis=1, keepdims=True))
    per_sample = jnp.sum(log_prob * mask_combined, axis=1) / cardinality
    return jnp.mean(per_sample)


if __name__ == "__main__":
    key = jax.random.PRNGKey(0)
    kp, kq, kr = jax.random.split(key, 3)

    # Test 1: multi row-tile grid (grid = (2, 1)), no padding.
    B, D = 16, 32
    projections = jax.random.normal(kp, (B, D), dtype=jnp.float32)
    targets = jnp.array([0, 0, 1, 1, 2, 2, 0, 1, 3, 3, 0, 2, 1, 3, 2, 0], dtype=jnp.int32)
    loss = jax.block_until_ready(supervised_contrastive_loss(projections, targets, tile_m=8))
    ref = _reference(projections, targets)
    assert jnp.allclose(loss, ref, atol=1e-3, rtol=1e-3), (loss, ref)

    # Test 2: B not a multiple of 8 -> exercises the row-padding / guard path.
    B2 = 12
    p2 = jax.random.normal(kq, (B2, D), dtype=jnp.float32)
    t2 = jnp.array([0, 0, 1, 1, 2, 2, 0, 1, 2, 1, 0, 2], dtype=jnp.int32)
    loss2 = jax.block_until_ready(supervised_contrastive_loss(p2, t2))
    ref2 = _reference(p2, t2)
    assert jnp.allclose(loss2, ref2, atol=1e-3, rtol=1e-3), (loss2, ref2)

    # Test 3: multiple column tiles + column padding (grid = (1, 2), b_pad_c > B).
    B3 = 192
    p3 = jax.random.normal(kr, (B3, D), dtype=jnp.float32)
    p3 = p3 / jnp.linalg.norm(p3, axis=1, keepdims=True)
    t3 = (jnp.arange(B3) % 4).astype(jnp.int32)
    loss3 = jax.block_until_ready(supervised_contrastive_loss(p3, t3, tile_n=128))
    ref3 = _reference(p3, t3)
    assert jnp.allclose(loss3, ref3, atol=1e-3, rtol=1e-3), (loss3, ref3)

    print("KERNEL_OK")
</pallas_src>

<mosaic_0001>
module attributes {stable_mosaic.version = 11 : i64} {
  func.func @kernel(%arg0: i32, %arg1: i32, %arg2: memref<8x32xf32, #tpu.memory_space<vmem>>, %arg3: memref<32x16xf32, #tpu.memory_space<vmem>>, %arg4: memref<8x1xi32, #tpu.memory_space<vmem>>, %arg5: memref<1x1x16xi32, #tpu.memory_space<vmem>>, %arg6: memref<8x1xf32, #tpu.memory_space<vmem>>, %arg7: memref<8x1xf32, #tpu.memory_space<vmem>>, %arg8: memref<1x8x16xf32, #tpu.memory_space<vmem>>) attributes {dimension_semantics = [#tpu.dimension_semantics<parallel>, #tpu.dimension_semantics<arbitrary>], iteration_bounds = array<i64: 2, 1>, scalar_prefetch = 0 : i64, scratch_operands = 2 : i64, tpu.core_type = #tpu.core_type<tc>, window_params = [{transform_indices = @transform_0, window_bounds = array<i64: 8, 32>}, {transform_indices = @transform_1, window_bounds = array<i64: 32, 16>}, {transform_indices = @transform_2, window_bounds = array<i64: 8, 1>}, {pipeline_mode = #tpu.pipeline_mode<synchronous>, transform_indices = @transform_3, window_bounds = array<i64: 1, 1, 16>}, {transform_indices = @transform_4, window_bounds = array<i64: 8, 1>}]} {
    %c0_i32 = arith.constant 0 : i32
    %0 = arith.cmpi eq, %arg1, %c0_i32 : i32
    %1 = arith.extui %0 : i1 to i32
    %c0_i32_0 = arith.constant 0 : i32
    %2 = arith.cmpi ne, %1, %c0_i32_0 : i32
    scf.if %2 {
      %cst_14 = arith.constant -1.000000e+30 : f32
      %20 = vector.broadcast %cst_14 : f32 to vector<8x1xf32>
      %c0_15 = arith.constant 0 : index
      %c0_16 = arith.constant 0 : index
      %21 = vector.load %arg7[%c0_15, %c0_16] : memref<8x1xf32, #tpu.memory_space<vmem>>, vector<8x1xf32>
      tpu.vector_store %arg7[%c0_15, %c0_16], %20 {strides = array<i32>} : memref<8x1xf32, #tpu.memory_space<vmem>>, vector<8x1xf32>,
    } else {
    }
    %c0 = arith.constant 0 : index
    %c0_1 = arith.constant 0 : index
    %3 = vector.load %arg2[%c0, %c0_1] : memref<8x32xf32, #tpu.memory_space<vmem>>, vector<8x32xf32>
    %cst = arith.constant 14.2857141 : f32
    %4 = vector.broadcast %cst : f32 to vector<8x32xf32>
    %5 = arith.mulf %3, %4 : vector<8x32xf32>
    %c0_2 = arith.constant 0 : index
    %c0_3 = arith.constant 0 : index
    %6 = vector.load %arg3[%c0_2, %c0_3] : memref<32x16xf32, #tpu.memory_space<vmem>>, vector<32x16xf32>
    %cst_4 = arith.constant dense<0.000000e+00> : vector<8x16xf32>
    %7 = tpu.matmul %5, %6, %cst_4 {dimension_numbers = #tpu.dot_dimension_numbers<[1], [0], [0], [1], [0, 0, 1, 1], [], []>} : vector<8x32xf32>, vector<32x16xf32>, vector<8x16xf32> -> vector<8x16xf32>
    %8 = arith.index_cast %arg1 : i32 to index
    %c0_5 = arith.constant 0 : index
    %c0_6 = arith.constant 0 : index
    %9 = vector.load %arg8[%8, %c0_5, %c0_6] : memref<1x8x16xf32, #tpu.memory_space<vmem>>, vector<1x8x16xf32>
    %10 = vector.shape_cast %9 : vector<1x8x16xf32> to vector<8x16xf32>
    %11 = vector.shape_cast %7 : vector<8x16xf32> to vector<1x8x16xf32>
    tpu.vector_store %arg8[%8, %c0_5, %c0_6], %11 {strides = array<i32>} : memref<1x8x16xf32, #tpu.memory_space<vmem>>, vector<1x8x16xf32>,
    %c0_7 = arith.constant 0 : index
    %c0_8 = arith.constant 0 : index
    %12 = vector.load %arg7[%c0_7, %c0_8] : memref<8x1xf32, #tpu.memory_space<vmem>>, vector<8x1xf32>
    %cst_9 = arith.constant dense<0xFF800000> : vector<8xf32>
    %13 = vector.multi_reduction <maximumf>, %7, %cst_9 [1] : vector<8x16xf32> to vector<8xf32>
    %14 = vector.shape_cast %13 : vector<8xf32> to vector<8x1xf32>
    %15 = arith.maximumf %12, %14 : vector<8x1xf32>
    %c0_10 = arith.constant 0 : index
    %c0_11 = arith.constant 0 : index
    %16 = vector.load %arg7[%c0_10, %c0_11] : memref<8x1xf32, #tpu.memory_space<vmem>>, vector<8x1xf32>
    tpu.vector_store %arg7[%c0_10, %c0_11], %15 {strides = array<i32>} : memref<8x1xf32, #tpu.memory_space<vmem>>, vector<8x1xf32>,
    %c0_i32_12 = arith.constant 0 : i32
    %17 = arith.cmpi eq, %arg1, %c0_i32_12 : i32
    %18 = arith.extui %17 : i1 to i32
    %c0_i32_13 = arith.constant 0 : i32
    %19 = arith.cmpi ne, %18, %c0_i32_13 : i32
    scf.if %19 {
      %c0_14 = arith.constant 0 : index
      %c0_15 = arith.constant 0 : index
      %20 = vector.load %arg7[%c0_14, %c0_15] : memref<8x1xf32, #tpu.memory_space<vmem>>, vector<8x1xf32>
      %c0_16 = arith.constant 0 : index
      %c0_17 = arith.constant 0 : index
      %21 = vector.load %arg4[%c0_16, %c0_17] : memref<8x1xi32, #tpu.memory_space<vmem>>, vector<8x1xi32>
      %c8_i32 = arith.constant 8 : i32
      %22 = arith.muli %arg0, %c8_i32 : i32
      %23 = tpu.iota {dimensions = array<i32: 0>} : vector<8x16xi32>
      %24 = vector.broadcast %22 : i32 to vector<8x16xi32>
      %25 = arith.addi %24, %23 : vector<8x16xi32>
      %cst_18 = arith.constant 0.000000e+00 : f32
      %26 = vector.broadcast %cst_18 : f32 to vector<8x1xf32>
      %c0_i32_19 = arith.constant 0 : i32
      %27 = arith.index_cast %c0_i32_19 : i32 to index
      %c0_20 = arith.constant 0 : index
      %c0_21 = arith.constant 0 : index
      %28 = vector.load %arg8[%27, %c0_20, %c0_21] : memref<1x8x16xf32, #tpu.memory_space<vmem>>, vector<1x8x16xf32>
      %29 = vector.shape_cast %28 : vector<1x8x16xf32> to vector<8x16xf32>
      %30 = vector.broadcast %20 : vector<8x1xf32> to vector<8x16xf32>
      %31 = arith.subf %29, %30 : vector<8x16xf32>
      %32 = math.exp %31 : vector<8x16xf32>
      %cst_22 = arith.constant 9.99999974E-6 : f32
      %33 = vector.broadcast %cst_22 : f32 to vector<8x16xf32>
      %34 = arith.addf %32, %33 : vector<8x16xf32>
      %c16_i32 = arith.constant 16 : i32
      %35 = arith.muli %c0_i32_19, %c16_i32 : i32
      %36 = tpu.iota {dimensions = array<i32: 1>} : vector<8x16xi32>
      %37 = vector.broadcast %35 : i32 to vector<8x16xi32>
      %38 = arith.addi %37, %36 : vector<8x16xi32>
      %39 = arith.cmpi ne, %25, %38 : vector<8x16xi32>
      %40 = arith.index_cast %c0_i32_19 : i32 to index
      %c0_23 = arith.constant 0 : index
      %c0_24 = arith.constant 0 : index
      %41 = vector.load %arg5[%40, %c0_23, %c0_24] : memref<1x1x16xi32, #tpu.memory_space<vmem>>, vector<1x1x16xi32>
      %42 = vector.shape_cast %41 : vector<1x1x16xi32> to vector<1x16xi32>
      %43 = vector.broadcast %21 : vector<8x1xi32> to vector<8x16xi32>
      %44 = vector.broadcast %42 : vector<1x16xi32> to vector<8x16xi32>
      %45 = arith.cmpi eq, %43, %44 : vector<8x16xi32>
      %46 = arith.andi %39, %45 : vector<8x16xi1>
      %cst_25 = arith.constant 0.000000e+00 : f32
      %47 = vector.broadcast %cst_25 : f32 to vector<8x16xf32>
      %48 = arith.select %39, %34, %47 : vector<8x16xi1>, vector<8x16xf32>
      %cst_26 = arith.constant dense<0.000000e+00> : vector<8xf32>
      %49 = vector.multi_reduction <add>, %48, %cst_26 [1] : vector<8x16xf32> to vector<8xf32>
      %50 = vector.shape_cast %49 : vector<8xf32> to vector<8x1xf32>
      %51 = arith.addf %26, %50 : vector<8x1xf32>
      %52 = math.log %34 : vector<8x16xf32>
      %cst_27 = arith.constant 0.000000e+00 : f32
      %53 = vector.broadcast %cst_27 : f32 to vector<8x16xf32>
      %54 = arith.select %46, %52, %53 : vector<8x16xi1>, vector<8x16xf32>
      %cst_28 = arith.constant dense<0.000000e+00> : vector<8xf32>
      %55 = vector.multi_reduction <add>, %54, %cst_28 [1] : vector<8x16xf32> to vector<8xf32>
      %56 = vector.shape_cast %55 : vector<8xf32> to vector<8x1xf32>
      %57 = arith.addf %26, %56 : vector<8x1xf32>
      %58 = arith.extui %46 : vector<8x16xi1> to vector<8x16xi32>
      %59 = arith.sitofp %58 : vector<8x16xi32> to vector<8x16xf32>
      %cst_29 = arith.constant dense<0.000000e+00> : vector<8xf32>
      %60 = vector.multi_reduction <add>, %59, %cst_29 [1] : vector<8x16xf32> to vector<8xf32>
      %61 = vector.shape_cast %60 : vector<8xf32> to vector<8x1xf32>
      %62 = arith.addf %26, %61 : vector<8x1xf32>
      %c1_i32 = arith.constant 1 : i32
      %cst_30 = arith.constant 1.000000e+00 : f32
      %63 = vector.broadcast %cst_30 : f32 to vector<8x1xf32>
      %64 = arith.maximumf %62, %63 : vector<8x1xf32>
      %65 = math.log %51 : vector<8x1xf32>
      %66 = arith.divf %57, %64 : vector<8x1xf32>
      %67 = arith.subf %65, %66 : vector<8x1xf32>
      %cst_31 = arith.constant 0.000000e+00 : f32
      %68 = vector.broadcast %cst_31 : f32 to vector<8x1xf32>
      %69 = arith.cmpf ogt, %62, %68 : vector<8x1xf32>
      %cst_32 = arith.constant 0.000000e+00 : f32
      %70 = vector.broadcast %cst_32 : f32 to vector<8x1xf32>
      %71 = arith.select %69, %67, %70 : vector<8x1xi1>, vector<8x1xf32>
      %c0_33 = arith.constant 0 : index
      %c0_34 = arith.constant 0 : index
      %72 = vector.load %arg6[%c0_33, %c0_34] : memref<8x1xf32, #tpu.memory_space<vmem>>, vector<8x1xf32>
      tpu.vector_store %arg6[%c0_33, %c0_34], %71 {strides = array<i32>} : memref<8x1xf32, #tpu.memory_space<vmem>>, vector<8x1xf32>,
    } else {
    }
    return
  }
  func.func @transform_0(%arg0: i32, %arg1: i32) -> (i32, i32) {
    %c0_i32 = arith.constant 0 : i32
    %c0_i32_0 = arith.constant 0 : i32
    return %arg0, %c0_i32 : i32, i32
  }
  func.func @transform_1(%arg0: i32, %arg1: i32) -> (i32, i32) {
    %c0_i32 = arith.constant 0 : i32
    %c0_i32_0 = arith.constant 0 : i32
    return %c0_i32, %arg1 : i32, i32
  }
  func.func @transform_2(%arg0: i32, %arg1: i32) -> (i32, i32) {
    %c0_i32 = arith.constant 0 : i32
    %c0_i32_0 = arith.constant 0 : i32
    return %arg0, %c0_i32 : i32, i32
  }
  func.func @transform_3(%arg0: i32, %arg1: i32) -> (i32, i32, i32) {
    %c0_i32 = arith.constant 0 : i32
    %c0_i32_0 = arith.constant 0 : i32
    %c0_i32_1 = arith.constant 0 : i32
    %c0_i32_2 = arith.constant 0 : i32
    return %c0_i32, %c0_i32_0, %c0_i32_1 : i32, i32, i32
  }
  func.func @transform_4(%arg0: i32, %arg1: i32) -> (i32, i32) {
    %c0_i32 = arith.constant 0 : i32
    %c0_i32_0 = arith.constant 0 : i32
    return %arg0, %c0_i32 : i32, i32
  }
}

</mosaic_0001>

<bundles_post_ra>
// kernel: tpu_custom_call.1
= control target key start
LH: loop header
LB: loop body
LE: loop exit
PB: predicated region body
PF: predicated region fallthrough
CT: control target
= control target key end

     0   :  { %s551_s15 = smov 0   ;;  %s553_s16 = smov 0   ;;  %s630_s0 = inlined_call_operand.vmem [shape: f32[16,32], index: 0, kind: input, shape index: {}]   ;;  %s631_s1 = inlined_call_operand.vmem [shape: f32[32,16], index: 1, kind: input, shape index: {}]   ;;  %s632_s2 = inlined_call_operand.vmem [shape: s32[16,1], index: 2, kind: input, shape index: {}]   ;;  %s633_s3 = inlined_call_operand.vmem [shape: s32[1,1,16], index: 3, kind: input, shape index: {}]   ;;  %s634_s4 = inlined_call_operand.vmem [shape: f32[16,1], index: 4, kind: output, shape index: {}]  }
   0x1   :  { %s555_s17 = smov 0  }
   0x2 LB: > { %s26_s18 = sadd.s32 1, %s517_s16  ;;  %p452_p0 = scmp.ge.s32.totalorder %s521_s17, 1  ;;  %s521_s17 = sphi %s555_s17, %s14_s17   ;;  %s517_s16 = sphi %s553_s16, %s638_s16   ;;  %s513_s15 = sphi %s551_s15, %s637_s15  }
   0x3   : > { %p28_p1 = scmp.ge.s32.totalorder %s26_s18, 2  ;;  %p191_p2 = scmp.lt.s32.totalorder %s521_s17, 3 }
   0x5   : > { %s640_s18 = smov (%p28_p1, %s26_s18), 0  ;;  %p192_p3 = pnand %p452_p0, %p191_p2 }
   0x6   : > { %p223_p4 = scmp.lt.s32.totalorder (!%p192_p3), %s513_s15, 1  ;;  %s457_s9 = sshll.u32 (!%p192_p3), %s513_s15, 3 }
   0x7   : > { %195 = sbr.rel (%p192_p3) target bundleno = 534 (0x216), region = 36 }
   0xc   : > { %v250_v0 = vld [vmem:[%s631_s1 + $0x18] sm:$0xff]  ;;  %v249_v1 = vld [vmem:[%s631_s1 + $0x10] sm:$0xff]  ;;  %v248_v2 = vld [vmem:[%s631_s1 + $0x8] sm:$0xff]  ;;  %s224_s25 = scalar_select %p223_p4, %s513_s15, 1  ;;  %vm251_vm0 = vcmask 261120   ;;  %vm243_vm1 = vcmask 7168   ;;  %v292_v11 = vlaneseq  ;;  %v294_v13 = vstv %s457_s9 }
   0xd   : > { %267 = vmatpush.msra.mxu0 %v250_v0  ;;  %v247_v3 = vld [vmem:[%s631_s1] sm:$0xff]  ;;  %v523_v7 = vmov 0   ;;  %v524_v8 = vmov -1e+30   ;;  %vm277_vm2 = vcmask 130048   ;;  %v525_v19 = vmov 0.0  }
   0xe   : > { %s585_s28 = sshll.u32 %s224_s25, 3  ;;  %489 = vset.pattern.permute.xlu1 %v523_v7  ;;  %244 = vst.msk [vmem:[#allocation2] sm:$0xff] %vm243_vm1, %v524_v8  ;;  %488 = vset.pattern.permute.xlu0 %v523_v7  ;;  %v490_v12 = vld [vmem:[%s633_s3] ss:$0 sm:$0xff]  ;;  %v293_v15 = vshrl.u32 %v292_v11, 7  ;;  %v307_v16 = vand.u32 127, %v292_v11 }
   0xf   : > { %268 = vmatpush.msra.mxu0 %v249_v1  ;;  %s226_s5 = scalar_lea.vmem %s630_s0, %s585_s28  ;;  %s234_s8 = scalar_lea.vmem %s632_s2, %s585_s28 }
  0x10   : > { %v245_v4 = vld [vmem:[%s226_s5] sm:$0xff]  ;;  %v295_v17 = vadd.s32 %v294_v13, %v293_v15  ;;  %s238_s14 = scalar_lea.vmem %s634_s4, %s585_s28 }
  0x11   : > { %269 = vmatpush.msra.mxu0 %v248_v2  ;;  %v246_v5 = vmul.f32 14.285714, %v245_v4  ;;  %v290_v6 = vld [vmem:[%s234_s8] sm:$0xff] }
  0x12   : > { %311 = vperm.xlu1 %489, %v290_v6   ;;  %vm308_vm4 = vcmp.ne.s32.totalorder %v295_v17, %v307_v16 }
  0x13   : > { %270 = vmatpush.msra.mxu0 %v247_v3 }
  0x14   : > { %456 = vmatmul.msk.f32.vlgmr.msra.gmra.mxu0 %vm251_vm0, %v246_v5 }
  0x15   : > { %v279_v22 = vld [vmem:[#allocation2] sm:$0xff] }
  0x84   : > { %v312_v14 = vpop.permute.xlu1 %311 }
  0x85   : > { %vm314_vm3 = vcmp.eq.s32.totalorder %v312_v14, %v490_v12 }
  0x86   : > { %vm603_vm5 = vmand %vm308_vm4, %vm314_vm3 }
  0x87   : > { %v458_v20 = vsel %vm603_vm5, 1.0, %v525_v19 }
  0x88   : > { %v330_v21 = vsel %vm277_vm2, %v458_v20, 0.0 }
  0x89   : > { %331 = vadd.xlane.f32.xlu1 %v330_v21 }
  0x91   : > { %v272_v9 = vpop.f32.mrf.mxu0 }
  0x92   : > { %278 = vst.msk [vmem:[#allocation3] sm:$0xff] %vm277_vm2, %v272_v9  ;;  %v280_v10 = vsel %vm277_vm2, %v272_v9, -inf }
  0x93   : > { %281 = vmax.xlane.f32.xlu0 %v280_v10 }
  0x99   : > { %v296_v27 = vld [vmem:[#allocation3] sm:$0xff] }
  0xfc   : > { %v332_v38 = vpop.xlane.xlu1 %331 }
  0xfd   : > { %v334_v39 = vmax.f32 %v332_v38, 1.0  ;;  %vm353_vm10 = vcmp.gt.f32.partialorder %v332_v38, 0.0 }
  0xff   : > { %vm342_vm6 = vweird.f32 %v334_v39  ;;  %v348_v45 = vand.u32 2147483648, %v334_v39  ;;  %v346_v47 = vand.u32 2147483647, %v334_v39 }
 0x101   : > { %v349_v48 = vor.u32 1.1754944e-38, %v348_v45  ;;  %vm347_vm9 = vcmp.eq.f32.partialorder %v346_v47, 8.507059e+37 }
 0x106   : > { %v282_v23 = vpop.xlane.xlu0 %281 }
 0x107   : > { %v283_v24 = vmax.f32 %v279_v22, %v282_v23 }
 0x109   : > { %285 = vst.msk [vmem:[#allocation2] sm:$0xff] %vm243_vm1, %v283_v24 }
 0x110   : > { %v289_v25 = vld [vmem:[#allocation2] sm:$0xff] }
 0x111   : > { %299 = vperm.xlu0 %488, %v289_v25  }
 0x183   : > { %v300_v26 = vpop.permute.xlu0 %299 }
 0x184   : > { %v302_v28 = vsub.f32 %v296_v27, %v300_v26 }
 0x186   : > { %v303_v29 = vmul.f32 1.442695, %v302_v28 }
 0x188   : > { %491 = vpow2.f32 %v303_v29 }
 0x18e   : > { %v492_v30 = vpop.eup %491 }
 0x18f   : > { %v305_v31 = vadd.f32 1e-05, %v492_v30 }
 0x191   : > { %v316_v32 = vsel %vm308_vm4, %v305_v31, 0.0  ;;  %493 = vlog2.f32 %v305_v31 }
 0x192   : > { %v317_v33 = vsel %vm277_vm2, %v316_v32, 0.0  ;;  %495 = vrcp.f32 %v334_v39 }
 0x193   : > { %318 = vadd.xlane.f32.xlu2 %v317_v33 }
 0x197   : > { %v494_v34 = vpop.eup %493 }
 0x198   : > { %v322_v35 = vmul.f32 0.6931472, %v494_v34  ;;  %v496_v40 = vpop.eup %495 }
 0x199   : > { %v338_v41 = vmul.f32 %v496_v40, %v334_v39  ;;  %vm343_vm7 = vweird.f32 %v496_v40 }
 0x19a   : > { %v323_v36 = vsel %vm603_vm5, %v322_v35, 0.0  ;;  %vm344_vm8 = vmor %vm342_vm6, %vm343_vm7 }
 0x19b   : > { %v324_v37 = vsel %vm277_vm2, %v323_v36, 0.0  ;;  %v339_v42 = vsub.f32 1.0, %v338_v41 }
 0x19c   : > { %325 = vadd.xlane.f32.xlu2 %v324_v37 }
 0x19d   : > { %v340_v43 = vmul.f32 %v496_v40, %v339_v42 }
 0x19f   : > { %v341_v46 = vadd.f32 %v496_v40, %v340_v43 }
 0x1a1   : > { %v345_v49 = vsel %vm344_vm8, %v496_v40, %v341_v46 }
 0x1a2   : > { %v350_v51 = vsel %vm347_vm9, %v349_v48, %v345_v49 }
 0x206   : > { %v319_v44 = vpop.xlane.xlu2 %318 }
 0x207   : > { %497 = vlog2.f32 %v319_v44 }
 0x20d   : > { %v498_v50 = vpop.eup %497 }
 0x20e   : > { %v336_v53 = vmul.f32 0.6931472, %v498_v50 }
 0x20f   : > { %v326_v52 = vpop.xlane.xlu2 %325 }
 0x210   : > { %v351_v54 = vmul.f32 %v350_v51, %v326_v52 }
 0x212   : > { %v352_v55 = vsub.f32 %v336_v53, %v351_v54 }
 0x214   : > { %v354_v56 = vsel %vm353_vm10, %v352_v55, 0.0 }
 0x215   : > { %355 = vst.msk [vmem:[%s238_s14] sm:$0xff] %vm243_vm1, %v354_v56 }
 0x216 PF: > { %s14_s17 = sadd.s32 1, %s521_s17   ;;  %s637_s15 = smov %s517_s16 }
 0x217   : > { %p11_p5 = scmp.ge.s32.totalorder %s14_s17, 4   ;;  %s638_s16 = smov %s640_s18 }
 0x219   :  { %13 = sbr.rel (!%p11_p5) target bundleno = 2 (0x2), region = 81 }

</bundles_post_ra>
